<compile_context>
chip_gen: v5e
topology: v5e:2x2
jax: 0.10.0
libtpu: 0.0.40
codegen_flags: <defaults>
</compile_context>

<pallas_src>
import functools

import jax
import jax.numpy as jnp
from jax.experimental import pallas as pl
from jax.experimental.pallas import tpu as pltpu


# ---------------------------------------------------------------------------
# Kernels
# ---------------------------------------------------------------------------

def _fused_kernel(x_ref, w_ref, b_ref, o_ref, *, eps, count):
    """Fast path: the whole (N, C, HW) tensor is resident in VMEM.
    Computes batch stats and the normalization in one shot (one HBM read,
    one HBM write)."""
    x = x_ref[...].astype(jnp.float32)                         # (N, C, HW)
    # Lane reduce first (XLU), then the cheap cross-N add (VPU).
    s = jnp.sum(jnp.sum(x, axis=-1, keepdims=True), axis=0, keepdims=True)
    ss = jnp.sum(jnp.sum(x * x, axis=-1, keepdims=True), axis=0, keepdims=True)
    inv_count = 1.0 / count
    mean = s * inv_count                                       # (1, C, 1)
    var = jnp.maximum(ss * inv_count - mean * mean, 0.0)       # biased variance
    inv_std = jax.lax.rsqrt(var + eps)
    scale = w_ref[...].astype(jnp.float32) * inv_std           # (1, C, 1)
    shift = b_ref[...].astype(jnp.float32) - mean * scale
    o_ref[...] = (x * scale + shift).astype(o_ref.dtype)


def _make_stats_kernel(hw_total, hw_tile, needs_mask):
    """Pass 1: per-(batch, channel) partial sum / sum-of-squares, packed as a
    (1, c_tile, 2) accumulator that stays resident across the HW grid axis."""

    def _stats_kernel(x_ref, stats_ref):
        h = pl.program_id(2)   # HW reduction axis (innermost, "arbitrary")

        @pl.when(h == 0)
        def _():
            stats_ref[...] = jnp.zeros_like(stats_ref)

        x = x_ref[0].astype(jnp.float32)                       # (c_tile, hw_tile)
        if needs_mask:
            # cdiv-style HW tiling: zero out-of-range lanes of the tail tile so
            # padding garbage never reaches the statistics.
            lane = jax.lax.broadcasted_iota(jnp.int32, x.shape, 1)
            valid = (h * hw_tile + lane) < hw_total
            x = jnp.where(valid, x, 0.0)
        s = jnp.sum(x, axis=-1, keepdims=True)                 # (c_tile, 1)
        ss = jnp.sum(x * x, axis=-1, keepdims=True)            # (c_tile, 1)
        stats_ref[...] += jnp.concatenate([s, ss], axis=-1)[None]

    return _stats_kernel


def _normalize_kernel(x_ref, scale_ref, shift_ref, o_ref):
    """Pass 2: fused per-channel affine, y = x * scale + shift (2 VALU ops/elem)."""
    x = x_ref[...].astype(jnp.float32)
    o_ref[...] = (x * scale_ref[...] + shift_ref[...]).astype(o_ref.dtype)


# ---------------------------------------------------------------------------
# Tiling / hardware helpers
# ---------------------------------------------------------------------------

def _vmem_capacity_bytes():
    try:
        return int(pltpu.get_tpu_info().vmem_capacity_bytes)
    except Exception:
        return 64 * 1024 * 1024   # conservative (v7x per-TC VMEM)


def _choose_tiles(C, HW, itemsize, target_bytes):
    """Pick (c_tile, hw_tile) for a (1, c_tile, hw_tile) block that
    (a) respects the (8, 128) block-shape rule, (b) stays near `target_bytes`
    so double-buffered in+out fits VMEM on every generation, and (c) keeps the
    lane (HW) axis as dense as possible."""
    c_align = max(8, 32 // itemsize)   # sublane packing: 8 f32 / 16 bf16 / 32 i8
    max_lanes = max(128, ((target_bytes // (c_align * itemsize)) // 128) * 128)
    if HW <= max_lanes or HW < 128:
        hw_tile = HW                   # full extent: always a legal block dim
    else:
        hw_tile = max_lanes            # multiple of 128; cdiv grid + tail mask
    c_budget = max(1, target_bytes // (hw_tile * itemsize))
    if C <= c_budget:
        c_tile = C                     # full extent: always legal
    else:
        c_tile = max(c_align, (c_budget // c_align) * c_align)
    return c_tile, hw_tile


# ---------------------------------------------------------------------------
# Public entry point
# ---------------------------------------------------------------------------

def triton_batch_norm_2d(x, weight, bias, eps=1e-5, *,
                         force_two_pass=False, target_bytes=None):
    """Training-mode BatchNorm2d: normalize with per-channel batch statistics
    computed over (N, H, W), then apply the per-channel affine.  x is NCHW."""
    N, C, H, W = x.shape
    HW = H * W
    x3 = x.reshape(N, C, HW)           # free reshape; no transpose / extra HBM pass
    itemsize = x.dtype.itemsize
    x_bytes = N * C * HW * itemsize

    vmem_cap = _vmem_capacity_bytes()
    if vmem_cap >= 100 * 2**20:        # v5e / v6e: 128 MiB physical VMEM
        default_target, vmem_limit = 4 * 2**20, 64 * 2**20
    else:                              # v7x: 64 MiB physical per TensorCore
        default_target, vmem_limit = 2 * 2**20, 48 * 2**20
    if target_bytes is None:
        target_bytes = default_target

    w3 = weight.astype(jnp.float32).reshape(1, C, 1)
    b3 = bias.astype(jnp.float32).reshape(1, C, 1)

    # ---- fused single-pass fast path: whole tensor resident in VMEM --------
    # Budget estimate: x in + y out + ~2 f32-sized temporaries.
    fused_bytes = 2 * x_bytes + 2 * N * C * HW * 4
    if (not force_two_pass) and fused_bytes <= int(0.45 * vmem_cap):
        out3 = pl.pallas_call(
            functools.partial(_fused_kernel, eps=float(eps), count=float(N * HW)),
            out_shape=jax.ShapeDtypeStruct((N, C, HW), x.dtype),
            grid_spec=pltpu.PrefetchScalarGridSpec(
                num_scalar_prefetch=0,
                grid=(1,),
                in_specs=[
                    pl.BlockSpec((N, C, HW), lambda i: (0, 0, 0)),
                    pl.BlockSpec((1, C, 1), lambda i: (0, 0, 0)),
                    pl.BlockSpec((1, C, 1), lambda i: (0, 0, 0)),
                ],
                out_specs=pl.BlockSpec((N, C, HW), lambda i: (0, 0, 0)),
            ),
            compiler_params=pltpu.CompilerParams(
                dimension_semantics=("arbitrary",),
                vmem_limit_bytes=vmem_limit,
            ),
        )(x3, w3, b3)
        return out3.reshape(N, C, H, W)

    # ---- general tiled two-pass path (2 reads + 1 write of x) --------------
    c_tile, hw_tile = _choose_tiles(C, HW, itemsize, target_bytes)
    n_c = pl.cdiv(C, c_tile)
    n_hw = pl.cdiv(HW, hw_tile)
    needs_mask = (n_hw * hw_tile) != HW

    # Pass 1: per-batch, per-channel partial (sum, sumsq) packed into (N, C, 2).
    # N / C grid axes are "parallel" (megacore-shardable on v7x); HW is the
    # innermost resident-accumulator reduction axis ("arbitrary").
    stats = pl.pallas_call(
        _make_stats_kernel(HW, hw_tile, needs_mask),
        out_shape=jax.ShapeDtypeStruct((N, C, 2), jnp.float32),
        grid_spec=pltpu.PrefetchScalarGridSpec(
            num_scalar_prefetch=0,
            grid=(N, n_c, n_hw),
            in_specs=[pl.BlockSpec((1, c_tile, hw_tile),
                                   lambda n, c, h: (n, c, h))],
            out_specs=pl.BlockSpec((1, c_tile, 2), lambda n, c, h: (n, c, 0)),
        ),
        compiler_params=pltpu.CompilerParams(
            dimension_semantics=("parallel", "parallel", "arbitrary"),
            vmem_limit_bytes=vmem_limit,
        ),
    )(x3)

    # Epilogue: tiny cross-N reduction, then fold mean / inv_std / weight / bias
    # into a single per-channel scale & shift.
    count = jnp.float32(N * HW)
    sums = jnp.sum(stats[..., 0], axis=0)                     # (C,)
    sumsqs = jnp.sum(stats[..., 1], axis=0)                   # (C,)
    mean = sums / count
    var = jnp.maximum(sumsqs / count - mean * mean, 0.0)      # biased variance
    inv_std = jax.lax.rsqrt(var + jnp.float32(eps))
    scale = weight.astype(jnp.float32) * inv_std
    shift = bias.astype(jnp.float32) - mean * scale
    scale3 = scale.reshape(1, C, 1)
    shift3 = shift.reshape(1, C, 1)

    # Pass 2: normalize, fully parallel grid (uses both TCs on v7x).  Tail
    # blocks (HW or C not divisible by the tile) get masked stores automatically.
    out3 = pl.pallas_call(
        _normalize_kernel,
        out_shape=jax.ShapeDtypeStruct((N, C, HW), x.dtype),
        grid_spec=pltpu.PrefetchScalarGridSpec(
            num_scalar_prefetch=0,
            grid=(N, n_c, n_hw),
            in_specs=[
                pl.BlockSpec((1, c_tile, hw_tile), lambda n, c, h: (n, c, h)),
                pl.BlockSpec((1, c_tile, 1), lambda n, c, h: (0, c, 0)),
                pl.BlockSpec((1, c_tile, 1), lambda n, c, h: (0, c, 0)),
            ],
            out_specs=pl.BlockSpec((1, c_tile, hw_tile), lambda n, c, h: (n, c, h)),
        ),
        compiler_params=pltpu.CompilerParams(
            dimension_semantics=("parallel", "parallel", "parallel"),
            vmem_limit_bytes=vmem_limit,
        ),
    )(x3, scale3, shift3)

    return out3.reshape(N, C, H, W)


# ---------------------------------------------------------------------------
# Self-test
# ---------------------------------------------------------------------------

if __name__ == "__main__":
    key = jax.random.PRNGKey(0)
    k1, k2 = jax.random.split(key)

    def reference(x, w, b, eps):
        mean = jnp.mean(x, axis=(0, 2, 3), keepdims=True)
        var = jnp.var(x, axis=(0, 2, 3), keepdims=True)   # biased, like BN training
        return ((x - mean) * jax.lax.rsqrt(var + eps)
                * w[None, :, None, None] + b[None, :, None, None])

    # Case 1: module-default shapes -> fused VMEM-resident fast path.
    N, C, H, W = 2, 4, 16, 16
    x = jax.random.normal(k1, (N, C, H, W), dtype=jnp.float32)
    # Module __init__: weight = ones(num_features), bias = zeros(num_features)
    weight = jnp.ones((C,), dtype=jnp.float32)
    bias = jnp.zeros((C,), dtype=jnp.float32)
    out = jax.block_until_ready(triton_batch_norm_2d(x, weight, bias, eps=1e-5))
    assert jnp.allclose(out, reference(x, weight, bias, 1e-5),
                        atol=1e-4, rtol=1e-4), "fused path mismatch"

    # Case 2: same input forced through the tiled two-pass path.
    out2 = jax.block_until_ready(
        triton_batch_norm_2d(x, weight, bias, eps=1e-5, force_two_pass=True))
    assert jnp.allclose(out2, reference(x, weight, bias, 1e-5),
                        atol=1e-4, rtol=1e-4), "two-pass path mismatch"

    # Case 3: odd shape (HW=200 not a multiple of 128, C=3 not a multiple of 8)
    # with a tiny tile budget so the cdiv HW tiling + tail masking is exercised.
    N, C, H, W = 2, 3, 10, 20
    x = jax.random.normal(k2, (N, C, H, W), dtype=jnp.float32)
    weight = jnp.full((C,), 1.5, dtype=jnp.float32)
    bias = jnp.full((C,), -0.25, dtype=jnp.float32)
    out3 = jax.block_until_ready(
        triton_batch_norm_2d(x, weight, bias, eps=1e-5,
                             force_two_pass=True, target_bytes=4096))
    assert jnp.allclose(out3, reference(x, weight, bias, 1e-5),
                        atol=1e-4, rtol=1e-4), "masked-tail path mismatch"

    print("KERNEL_OK")
</pallas_src>

<mosaic_0001>
module attributes {stable_mosaic.version = 11 : i64} {
  func.func @_fused_kernel(%arg0: i32, %arg1: memref<2x4x256xf32, #tpu.memory_space<vmem>>, %arg2: memref<1x4x1xf32, #tpu.memory_space<vmem>>, %arg3: memref<1x4x1xf32, #tpu.memory_space<vmem>>, %arg4: memref<2x4x256xf32, #tpu.memory_space<vmem>>) attributes {dimension_semantics = [#tpu.dimension_semantics<arbitrary>], iteration_bounds = array<i64: 1>, scalar_prefetch = 0 : i64, scratch_operands = 0 : i64, tpu.core_type = #tpu.core_type<tc>, window_params = [{pipeline_mode = #tpu.pipeline_mode<synchronous>, transform_indices = @transform_0, window_bounds = array<i64: 2, 4, 256>}, {pipeline_mode = #tpu.pipeline_mode<synchronous>, transform_indices = @transform_1, window_bounds = array<i64: 1, 4, 1>}, {pipeline_mode = #tpu.pipeline_mode<synchronous>, transform_indices = @transform_2, window_bounds = array<i64: 1, 4, 1>}, {pipeline_mode = #tpu.pipeline_mode<synchronous>, transform_indices = @transform_3, window_bounds = array<i64: 2, 4, 256>}]} {
    %c0 = arith.constant 0 : index
    %c0_0 = arith.constant 0 : index
    %c0_1 = arith.constant 0 : index
    %0 = vector.load %arg1[%c0, %c0_0, %c0_1] : memref<2x4x256xf32, #tpu.memory_space<vmem>>, vector<2x4x256xf32>
    %cst = arith.constant dense<0.000000e+00> : vector<2x4xf32>
    %1 = vector.multi_reduction <add>, %0, %cst [2] : vector<2x4x256xf32> to vector<2x4xf32>
    %2 = vector.shape_cast %1 : vector<2x4xf32> to vector<2x4x1xf32>
    %cst_2 = arith.constant dense<0.000000e+00> : vector<4x1xf32>
    %3 = vector.multi_reduction <add>, %2, %cst_2 [0] : vector<2x4x1xf32> to vector<4x1xf32>
    %4 = vector.shape_cast %3 : vector<4x1xf32> to vector<1x4x1xf32>
    %5 = arith.mulf %0, %0 : vector<2x4x256xf32>
    %cst_3 = arith.constant dense<0.000000e+00> : vector<2x4xf32>
    %6 = vector.multi_reduction <add>, %5, %cst_3 [2] : vector<2x4x256xf32> to vector<2x4xf32>
    %7 = vector.shape_cast %6 : vector<2x4xf32> to vector<2x4x1xf32>
    %cst_4 = arith.constant dense<0.000000e+00> : vector<4x1xf32>
    %8 = vector.multi_reduction <add>, %7, %cst_4 [0] : vector<2x4x1xf32> to vector<4x1xf32>
    %9 = vector.shape_cast %8 : vector<4x1xf32> to vector<1x4x1xf32>
    %cst_5 = arith.constant 0.001953125 : f32
    %10 = vector.broadcast %cst_5 : f32 to vector<1x4x1xf32>
    %11 = arith.mulf %4, %10 : vector<1x4x1xf32>
    %cst_6 = arith.constant 0.001953125 : f32
    %12 = vector.broadcast %cst_6 : f32 to vector<1x4x1xf32>
    %13 = arith.mulf %9, %12 : vector<1x4x1xf32>
    %14 = arith.mulf %11, %11 : vector<1x4x1xf32>
    %15 = arith.subf %13, %14 : vector<1x4x1xf32>
    %cst_7 = arith.constant 0.000000e+00 : f32
    %16 = vector.broadcast %cst_7 : f32 to vector<1x4x1xf32>
    %17 = arith.maximumf %15, %16 : vector<1x4x1xf32>
    %cst_8 = arith.constant 9.99999974E-6 : f32
    %18 = vector.broadcast %cst_8 : f32 to vector<1x4x1xf32>
    %19 = arith.addf %17, %18 : vector<1x4x1xf32>
    %20 = math.rsqrt %19 : vector<1x4x1xf32>
    %c0_9 = arith.constant 0 : index
    %c0_10 = arith.constant 0 : index
    %c0_11 = arith.constant 0 : index
    %21 = vector.load %arg2[%c0_9, %c0_10, %c0_11] : memref<1x4x1xf32, #tpu.memory_space<vmem>>, vector<1x4x1xf32>
    %22 = arith.mulf %21, %20 : vector<1x4x1xf32>
    %c0_12 = arith.constant 0 : index
    %c0_13 = arith.constant 0 : index
    %c0_14 = arith.constant 0 : index
    %23 = vector.load %arg3[%c0_12, %c0_13, %c0_14] : memref<1x4x1xf32, #tpu.memory_space<vmem>>, vector<1x4x1xf32>
    %24 = arith.mulf %11, %22 : vector<1x4x1xf32>
    %25 = arith.subf %23, %24 : vector<1x4x1xf32>
    %26 = vector.broadcast %22 : vector<1x4x1xf32> to vector<2x4x256xf32>
    %27 = arith.mulf %0, %26 : vector<2x4x256xf32>
    %28 = vector.broadcast %25 : vector<1x4x1xf32> to vector<2x4x256xf32>
    %29 = arith.addf %27, %28 : vector<2x4x256xf32>
    %c0_15 = arith.constant 0 : index
    %c0_16 = arith.constant 0 : index
    %c0_17 = arith.constant 0 : index
    %30 = vector.load %arg4[%c0_15, %c0_16, %c0_17] : memref<2x4x256xf32, #tpu.memory_space<vmem>>, vector<2x4x256xf32>
    tpu.vector_store %arg4[%c0_15, %c0_16, %c0_17], %29 {strides = array<i32>} : memref<2x4x256xf32, #tpu.memory_space<vmem>>, vector<2x4x256xf32>,
    return
  }
  func.func @transform_0(%arg0: i32) -> (i32, i32, i32) {
    %c0_i32 = arith.constant 0 : i32
    %c0_i32_0 = arith.constant 0 : i32
    %c0_i32_1 = arith.constant 0 : i32
    %c0_i32_2 = arith.constant 0 : i32
    return %c0_i32, %c0_i32_0, %c0_i32_1 : i32, i32, i32
  }
  func.func @transform_1(%arg0: i32) -> (i32, i32, i32) {
    %c0_i32 = arith.constant 0 : i32
    %c0_i32_0 = arith.constant 0 : i32
    %c0_i32_1 = arith.constant 0 : i32
    %c0_i32_2 = arith.constant 0 : i32
    return %c0_i32, %c0_i32_0, %c0_i32_1 : i32, i32, i32
  }
  func.func @transform_2(%arg0: i32) -> (i32, i32, i32) {
    %c0_i32 = arith.constant 0 : i32
    %c0_i32_0 = arith.constant 0 : i32
    %c0_i32_1 = arith.constant 0 : i32
    %c0_i32_2 = arith.constant 0 : i32
    return %c0_i32, %c0_i32_0, %c0_i32_1 : i32, i32, i32
  }
  func.func @transform_3(%arg0: i32) -> (i32, i32, i32) {
    %c0_i32 = arith.constant 0 : i32
    %c0_i32_0 = arith.constant 0 : i32
    %c0_i32_1 = arith.constant 0 : i32
    %c0_i32_2 = arith.constant 0 : i32
    return %c0_i32, %c0_i32_0, %c0_i32_1 : i32, i32, i32
  }
}

</mosaic_0001>

<bundles_post_ra>
// kernel: tpu_custom_call.1
= control target key start
LH: loop header
LB: loop body
LE: loop exit
PB: predicated region body
PF: predicated region fallthrough
CT: control target
= control target key end

     0   :  { %8 = vsyncpa [#allocation3], 0  ;;  %s282_s0 = inlined_call_operand.hbm [shape: f32[2,4,256], index: 0, kind: input, shape index: {}]   ;;  %s283_s1 = inlined_call_operand.vmem [shape: f32[1,4,1], index: 1, kind: input, shape index: {}]   ;;  %s284_s2 = inlined_call_operand.vmem [shape: f32[1,4,1], index: 2, kind: input, shape index: {}]   ;;  %s285_s3 = inlined_call_operand.hbm [shape: f32[2,4,256], index: 3, kind: output, shape index: {}]  }
   0x1   :  { %9 = vsyncpa [#allocation4], 0  ;;  %s14_s14 = sshll.u32 %s282_s0, 4  ;;  %s214_s15 = smov [#allocation2]   ;;  %s15_s14 = int_to_ptr.hbm [resolvable:$true] %s14_s14 }
   0x2   :  { %s16_s16 = sshll.u32 %s214_s15, 4  ;;  %s215_s17 = smov 128   ;;  %s17_s16 = int_to_ptr.vmem [resolvable:$true] %s16_s16 }
   0x3   :  { %s216_s18 = smov 8  }
   0x4   :  { %22 = dma.hbm_to_vmem [thread:$0]  %s15_s14, 256, %s17_s16, [#allocation3], %s215_s17, %s215_s17, %s216_s18  }
   0x5   :  { %210 = dma.done.wait [#allocation3], 256  }
   0x6   :  { %211 = vsyncadd [#allocation3], 4294967040  ;;  %v246_v0 = vld [vmem:[#allocation2] sm:$0xff]  ;;  %v248_v1 = vld [vmem:[#allocation2 + $0x8] sm:$0xff]  ;;  %vm46_vm0 = vcmask 1043456   ;;  %v217_v25 = vmov 0  }
   0x7   :  { %35 = vst [vmem:[#allocation1] ss:$2 sm:$0xff] %v246_v0  ;;  %v60_v2 = vmul.f32 %v246_v0, %v246_v0  ;;  %v61_v3 = vmul.f32 %v248_v1, %v248_v1  ;;  %158 = vset.pattern.permute.xlu2 %v217_v25  ;;  %159 = vset.pattern.permute.xlu0 %v217_v25  ;;  %v104_v47 = vld [vmem:[%s283_s1] sm:$0xf]  ;;  %v218_v53 = vmov 839922192  }
   0x8   :  { %39 = vst [vmem:[#allocation1 + $0x10] ss:$2 sm:$0xff] %v248_v1  ;;  %v106_v51 = vld [vmem:[%s284_s2] sm:$0xf]  ;;  %v114_v54 = vunpack.c.l.s4 %v218_v53  ;;  %s219_s1 = smov [#allocation5]   ;;  %s139_s25 = sshll.u32 %s285_s3, 4  ;;  %s140_s25 = int_to_ptr.hbm [resolvable:$true] %s139_s25 }
   0x9   :  { %s137_s22 = sshll.u32 %s219_s1, 4  ;;  %s138_s22 = int_to_ptr.vmem [resolvable:$true] %s137_s22 }
   0xa   :  { %v115_v56 = vunpack.c.0.s8 %v114_v54 }
   0xe   :  { %v36_v4 = vld.sshfl [vmem:[#allocation1] sm:$0xff pattern:$0x75316420]  ;;  %v37_v5 = vld.sshfl [vmem:[#allocation1 + $0x8] sm:$0xff pattern:$0x75316420] }
   0xf   :  { %v47_v6 = vsel %vm46_vm0, %v36_v4, 0.0  ;;  %v48_v7 = vsel %vm46_vm0, %v37_v5, 0.0  ;;  %64 = vst [vmem:[#allocation1] ss:$2 sm:$0xff] %v60_v2 }
  0x10   :  { %v49_v8 = vadd.f32 %v48_v7, %v47_v6  ;;  %v40_v9 = vld.sshfl [vmem:[#allocation1 + $0x10] sm:$0xff pattern:$0x75316420]  ;;  %v41_v10 = vld.sshfl [vmem:[#allocation1 + $0x18] sm:$0xff pattern:$0x75316420] }
  0x11   :  { %68 = vst [vmem:[#allocation1 + $0x10] ss:$2 sm:$0xff] %v61_v3  ;;  %v52_v11 = vsel %vm46_vm0, %v40_v9, 0.0  ;;  %v53_v12 = vsel %vm46_vm0, %v41_v10, 0.0 }
  0x12   :  { %50 = vadd.xlane.f32.xlu0 %v49_v8  ;;  %v54_v15 = vadd.f32 %v53_v12, %v52_v11 }
  0x16   :  { %v65_v13 = vld.sshfl [vmem:[#allocation1] sm:$0xff pattern:$0x75316420]  ;;  %v66_v14 = vld.sshfl [vmem:[#allocation1 + $0x8] sm:$0xff pattern:$0x75316420] }
  0x17   :  { %v75_v16 = vsel %vm46_vm0, %v65_v13, 0.0  ;;  %v76_v17 = vsel %vm46_vm0, %v66_v14, 0.0 }
  0x18   :  { %v77_v18 = vadd.f32 %v76_v17, %v75_v16  ;;  %v69_v19 = vld.sshfl [vmem:[#allocation1 + $0x10] sm:$0xff pattern:$0x75316420]  ;;  %v70_v20 = vld.sshfl [vmem:[#allocation1 + $0x18] sm:$0xff pattern:$0x75316420] }
  0x19   :  { %v80_v21 = vsel %vm46_vm0, %v69_v19, 0.0  ;;  %v81_v22 = vsel %vm46_vm0, %v70_v20, 0.0 }
  0x1a   :  { %78 = vadd.xlane.f32.xlu1 %v77_v18  ;;  %55 = vadd.xlane.f32.xlu0 %v54_v15  ;;  %v82_v23 = vadd.f32 %v81_v22, %v80_v21 }
  0x22   :  { %83 = vadd.xlane.f32.xlu1 %v82_v23 }
  0x85   :  { %v51_v24 = vpop.xlane.xlu0 %50 }
  0x86   :  { %v57_v29 = vsel %vm46_vm0, %v51_v24, 0.0 }
  0x8d   :  { %v79_v26 = vpop.xlane.xlu1 %78  ;;  %v56_v27 = vpop.xlane.xlu0 %55 }
  0x8e   :  { %v58_v28 = vsel %vm46_vm0, %v56_v27, 0.0  ;;  %v85_v33 = vsel %vm46_vm0, %v79_v26, 0.0 }
  0x8f   :  { %v59_v30 = vadd.f32 %v58_v28, %v57_v29 }
  0x91   :  { %v88_v31 = vmul.f32 0.001953125, %v59_v30 }
  0x93   :  { %v90_v36 = vmul.f32 %v88_v31, %v88_v31 }
  0x95   :  { %v84_v32 = vpop.xlane.xlu1 %83 }
  0x96   :  { %v86_v34 = vsel %vm46_vm0, %v84_v32, 0.0 }
  0x97   :  { %v87_v35 = vadd.f32 %v86_v34, %v85_v33 }
  0x99   :  { %v89_v37 = vmul.f32 0.001953125, %v87_v35 }
  0x9b   :  { %v91_v38 = vsub.f32 %v89_v37, %v90_v36 }
  0x9d   :  { %v92_v39 = vmax.f32 %v91_v38, 0.0 }
  0x9f   :  { %v93_v40 = vadd.f32 1e-05, %v92_v39 }
  0xa1   :  { %160 = vrsqrt.f32 %v93_v40  ;;  %vm100_vm2 = vweird.f32 %v93_v40 }
  0xa7   :  { %v161_v41 = vpop.eup %160 }
  0xa8   :  { %v95_v42 = vmul.f32 %v161_v41, %v93_v40  ;;  %vm101_vm1 = vweird.f32 %v161_v41 }
  0xa9   :  { %vm102_vm3 = vmor %vm100_vm2, %vm101_vm1 }
  0xaa   :  { %v96_v43 = vmul.f32 %v161_v41, %v95_v42 }
  0xac   :  { %v97_v44 = vmul.f32 0.5, %v96_v43 }
  0xae   :  { %v98_v45 = vsub.f32 1.5, %v97_v44 }
  0xb0   :  { %v99_v46 = vmul.f32 %v161_v41, %v98_v45 }
  0xb2   :  { %v103_v48 = vsel %vm102_vm3, %v161_v41, %v99_v46 }
  0xb3   :  { %v105_v49 = vmul.f32 %v104_v47, %v103_v48 }
  0xb5   :  { %111 = vperm.xlu2 %158, %v105_v49   ;;  %v107_v50 = vmul.f32 %v105_v49, %v88_v31 }
  0xb7   :  { %v108_v52 = vsub.f32 %v106_v51, %v107_v50 }
  0xbd   :  { %122 = vperm.xlu2 %158, %v108_v52  }
 0x10f   :  { %v112_v55 = vpop.permute.xlu2 %111 }
 0x110   :  { %v116_v57 = vperm.slane %v112_v55, %v115_v56 }
 0x112   :  { %v118_v59 = vmul.f32 %v116_v57, %v246_v0  ;;  %v119_v60 = vmul.f32 %v116_v57, %v248_v1 }
 0x117   :  { %v123_v58 = vpop.permute.xlu2 %122 }
 0x118   :  { %v127_v61 = vperm.slane %v123_v58, %v115_v56 }
 0x11a   :  { %v129_v62 = vadd.f32 %v127_v61, %v118_v59  ;;  %v130_v63 = vadd.f32 %v127_v61, %v119_v60 }
 0x11c   :  { %131 = vst [vmem:[#allocation5] sm:$0xff] %v129_v62 }
 0x11d   :  { %132 = vst [vmem:[#allocation5 + $0x8] sm:$0xff] %v130_v63 }
 0x11e   :  { %145 = dma.vmem_to_hbm [thread:$0]  %s138_s22, 256, %s140_s25, [#allocation4], %s215_s17, %s215_s17, %s216_s18  }
 0x11f   :  { %212 = dma.done.wait [#allocation4], 256  }
 0x120   :  { %213 = vsyncadd [#allocation4], 4294967040 }
 0x121   :  { %150 = vsyncpa [#allocation3], 1 }
 0x122   :  { %151 = vsyncpa [#allocation4], 1 }

</bundles_post_ra>
